<compile_context>
chip_gen: v7x
topology: tpu7x:2x2x1
jax: 0.10.0
libtpu: 0.0.40
codegen_flags: <defaults>
</compile_context>

<pallas_src>
import jax
import jax.numpy as jnp
from jax.experimental import pallas as pl
from jax.experimental.pallas import tpu as pltpu

EPS = 1e-5

# bf16 operands on every generation; accumulation stays f32.
MATMUL_DTYPE = jnp.bfloat16

K = 7     # widest conv window (covers conv1 k=7/d=1, conv2 k=3/d=3, conv3 k=3/d=2)
PAD = 8   # sublane-aligned interior offset inside the padded scratch (>= halo of 3)


# --------------------------------------------------------------------------- kernel
def sefe_block_kernel(x_ref, wpack_ref, bpack_ref, wcx_ref, wcc_ref, bc_ref,
                      se1_ref, se2_ref, out_ref, xpad_scr):
    """One batch element per grid step: dilated convs (+folded BN, ReLU) via a
    single im2col matmul, split 1x1 combine (+folded BN, ReLU), SE gate."""
    L, Cin = x_ref.shape
    mm_dtype = wpack_ref.dtype

    # Cast the activation to the matmul dtype ONCE; the padded copy and the
    # im2col slab are built directly in that dtype.
    x = x_ref[...].astype(mm_dtype)                            # (L, Cin)

    # Zero-padded activation in VMEM: zero only the 3-row halos and store the
    # interior at a sublane-aligned offset (unmasked aligned store).
    xpad_scr[PAD - 3:PAD, :] = jnp.zeros((3, Cin), mm_dtype)
    xpad_scr[PAD + L:PAD + L + 3, :] = jnp.zeros((3, Cin), mm_dtype)
    xpad_scr[PAD:PAD + L, :] = x

    # im2col: tap k of the 7-wide window starts at padded row PAD-3+k.  ONE MXU
    # matmul (L, 7*Cin) @ (7*Cin, 3*Cout) evaluates conv1|conv2|conv3 at once:
    # conv1 uses taps {0..6}, conv2 (dil=3, pad=3) taps {0,3,6}, conv3 (dil=2,
    # pad=2) taps {1,3,5}; unused taps are zero columns packed at prep time.
    # TODO(synk): if the (L, 7*Cin) slab ever exceeds v7x's 64 MiB VMEM budget at
    # production L, switch to an unrolled per-tap (L,Cin)@(Cin,3*Cout) accumulation.
    slab = jnp.concatenate(
        [xpad_scr[PAD - 3 + k:PAD - 3 + k + L, :] for k in range(K)], axis=-1)
    convs = jnp.dot(slab, wpack_ref[...], preferred_element_type=jnp.float32)
    convs = jnp.maximum(convs + bpack_ref[...], 0.0)           # (L, 3*Cout)

    # 1x1 combine conv (+folded BN, ReLU): x-part and conv-part accumulated
    # directly -- no lane-axis concatenate of [x, c1, c2, c3].
    comb = jnp.dot(x, wcx_ref[...], preferred_element_type=jnp.float32)
    comb = comb + jnp.dot(convs.astype(mm_dtype), wcc_ref[...],
                          preferred_element_type=jnp.float32)
    comb = jnp.maximum(comb + bc_ref[...], 0.0)                # (L, Cout), f32

    # Squeeze-and-Excitation (reduction_ratio=1, Linear layers have no bias).
    y = jnp.mean(comb, axis=0, keepdims=True)                  # AdaptiveAvgPool1d(1)
    y = jnp.maximum(jnp.dot(y.astype(mm_dtype), se1_ref[...],
                            preferred_element_type=jnp.float32), 0.0)
    y = jax.nn.sigmoid(jnp.dot(y.astype(mm_dtype), se2_ref[...],
                               preferred_element_type=jnp.float32))

    # TODO(synk): at production sizes with Cout < 128 this store is lane-masked;
    # fold multiple rows into one lane-dense (L*Cout) slab if writeback-bound.
    out_ref[...] = comb * y


# --------------------------------------------------------------------------- wrapper
def sefe_block_forward(x, p):
    B, L, Cin = x.shape
    Cout = p['wcx'].shape[-1]
    mm = p['wpack'].dtype

    def full(a):  # constant index_map: weight stays VMEM-resident across steps
        return pl.BlockSpec(a.shape, lambda b: (0, 0))

    flops = (2 * B * L * (K * Cin * 3 * Cout + Cin * Cout + 3 * Cout * Cout)
             + 2 * B * 2 * Cout * Cout)
    bytes_accessed = 4 * B * L * (Cin + Cout) + sum(
        int(v.size) * v.dtype.itemsize for v in p.values())

    return pl.pallas_call(
        sefe_block_kernel,
        out_shape=jax.ShapeDtypeStruct((B, L, Cout), jnp.float32),
        grid=(B,),  # one batch element per step; halo stays inside the tile
        in_specs=[pl.BlockSpec((None, L, Cin), lambda b: (b, 0, 0)),
                  full(p['wpack']), full(p['bpack']),
                  full(p['wcx']), full(p['wcc']), full(p['bc']),
                  full(p['se1']), full(p['se2'])],
        out_specs=pl.BlockSpec((None, L, Cout), lambda b: (b, 0, 0)),
        scratch_shapes=[pltpu.VMEM((L + 2 * PAD, Cin), mm)],   # padded activation
        compiler_params=pltpu.CompilerParams(
            dimension_semantics=("parallel",)),                # megacore on v7x
        cost_estimate=pl.CostEstimate(flops=flops, transcendentals=B * Cout,
                                      bytes_accessed=bytes_accessed),
    )(x, p['wpack'], p['bpack'], p['wcx'], p['wcc'], p['bc'],
      p['se1'], p['se2'])


sefe_block_forward_jit = jax.jit(sefe_block_forward)


# --------------------------------------------------------------------------- params
def init_raw_params(key, cin, cout):
    """PyTorch-layout parameters of SEFEBlock (conv weights (Cout,Cin,K), BN stats...)."""
    ks = iter(jax.random.split(key, 32))

    def nrm(shape, s=0.1):
        return (s * jax.random.normal(next(ks), shape)).astype(jnp.float32)

    def uni(shape, lo, hi):
        return jax.random.uniform(next(ks), shape, jnp.float32, lo, hi)

    def bn_params():
        return dict(gamma=uni((cout,), 0.8, 1.2), beta=nrm((cout,), 0.05),
                    mean=nrm((cout,), 0.05), var=uni((cout,), 0.5, 1.5))

    return dict(
        w1=nrm((cout, cin, 7)), b1=nrm((cout,), 0.02), bn1=bn_params(),
        w2=nrm((cout, cin, 3)), b2=nrm((cout,), 0.02), bn2=bn_params(),
        w3=nrm((cout, cin, 3)), b3=nrm((cout,), 0.02), bn3=bn_params(),
        wc=nrm((cout, cin + 3 * cout, 1)), bc=nrm((cout,), 0.02), bnc=bn_params(),
        se1=nrm((cout, cout)),      # nn.Linear(C, C//r, bias=False), r=1
        se2=nrm((cout, cout)),      # nn.Linear(C//r, C, bias=False)
    )


def _fold_bn(w, b, bn):
    # eval-mode BatchNorm1d folded exactly into the preceding conv (running stats)
    s = bn['gamma'] / jnp.sqrt(bn['var'] + EPS)
    return w * s[:, None, None], (b - bn['mean']) * s + bn['beta']


def fold_and_pack(raw, cin, cout):
    """Fold BN into convs, pack the 3 dilated convs into one (7*Cin, 3*Cout) im2col
    weight (bf16), split + pre-transpose the 1x1 combine conv and the SE linears."""
    w1, b1 = _fold_bn(raw['w1'], raw['b1'], raw['bn1'])
    w2, b2 = _fold_bn(raw['w2'], raw['b2'], raw['bn2'])
    w3, b3 = _fold_bn(raw['w3'], raw['b3'], raw['bn3'])
    wc, bc = _fold_bn(raw['wc'], raw['bc'], raw['bnc'])
    wc = wc[:, :, 0]                                        # (Cout, Cin+3*Cout)

    wpack = jnp.zeros((7 * cin, 3 * cout), jnp.float32)
    for k in range(7):                                      # conv1: k=7, dil=1, pad=3
        wpack = wpack.at[k * cin:(k + 1) * cin, 0:cout].set(w1[:, :, k].T)
    for k, off in enumerate((0, 3, 6)):                     # conv2: k=3, dil=3, pad=3
        wpack = wpack.at[off * cin:(off + 1) * cin, cout:2 * cout].set(w2[:, :, k].T)
    for k, off in enumerate((1, 3, 5)):                     # conv3: k=3, dil=2, pad=2
        wpack = wpack.at[off * cin:(off + 1) * cin, 2 * cout:3 * cout].set(w3[:, :, k].T)
    bpack = jnp.concatenate([b1, b2, b3])[None, :]          # (1, 3*Cout), f32

    md = MATMUL_DTYPE
    return dict(
        wpack=wpack.astype(md), bpack=bpack,
        wcx=wc[:, :cin].T.astype(md),                       # (Cin,    Cout)
        wcc=wc[:, cin:].T.astype(md),                       # (3*Cout, Cout)
        bc=bc[None, :],                                     # (1, Cout), f32
        se1=raw['se1'].T.astype(md),                        # (Cout, Cout), (In,Out)
        se2=raw['se2'].T.astype(md),
    )


# --------------------------------------------------------------------------- reference
def ref_forward(x, raw):
    """Pure-JAX (XLA) reference of the PyTorch SEFEBlock.forward (eval mode)."""
    hi = jax.lax.Precision.HIGHEST

    def conv1d(xc, w, b, pad, dil):
        out = jax.lax.conv_general_dilated(
            xc, w, window_strides=(1,), padding=[(pad, pad)], rhs_dilation=(dil,),
            dimension_numbers=('NCH', 'OIH', 'NCH'), precision=hi)
        return out + b[None, :, None]

    def bn(z, s):
        sc = s['gamma'] / jnp.sqrt(s['var'] + EPS)
        return (z - s['mean'][None, :, None]) * sc[None, :, None] + s['beta'][None, :, None]

    xc = jnp.transpose(x, (0, 2, 1))                         # permute(0,2,1): (B, Cin, L)
    c1 = jax.nn.relu(bn(conv1d(xc, raw['w1'], raw['b1'], 3, 1), raw['bn1']))
    c2 = jax.nn.relu(bn(conv1d(xc, raw['w2'], raw['b2'], 3, 3), raw['bn2']))
    c3 = jax.nn.relu(bn(conv1d(xc, raw['w3'], raw['b3'], 2, 2), raw['bn3']))
    cat = jnp.concatenate([xc, c1, c2, c3], axis=1)
    comb = jax.nn.relu(bn(conv1d(cat, raw['wc'], raw['bc'], 0, 1), raw['bnc']))
    y = jnp.mean(comb, axis=2)                               # AdaptiveAvgPool1d(1)
    y = jax.nn.relu(jnp.dot(y, raw['se1'].T, precision=hi))
    y = jax.nn.sigmoid(jnp.dot(y, raw['se2'].T, precision=hi))
    out = comb * y[:, :, None]
    return jnp.transpose(out, (0, 2, 1))                     # permute(0,2,1): (B, L, Cout)


# --------------------------------------------------------------------------- main
if __name__ == "__main__":
    key = jax.random.PRNGKey(0)
    kx, kp = jax.random.split(key)

    B, L, Cin, Cout = 2, 16, 64, 32                          # SEFEBlock(64, 32), seq_len 16
    x = jax.random.normal(kx, (B, L, Cin), dtype=jnp.float32)
    raw = init_raw_params(kp, Cin, Cout)
    params = fold_and_pack(raw, Cin, Cout)

    out = sefe_block_forward_jit(x, params)
    jax.block_until_ready(out)
    assert out.shape == (B, L, Cout) and out.dtype == jnp.float32

    # correctness check against a pure-JAX transcription of the PyTorch module
    # (tolerance accounts for bf16 MXU operands; accumulation is f32)
    ref = ref_forward(x, raw)
    err = float(jnp.max(jnp.abs(out - ref)))
    tol = 5e-2 * (1.0 + float(jnp.max(jnp.abs(ref))))
    assert err < tol, f"mismatch vs reference: max abs err {err} (tol {tol})"

    print("KERNEL_OK")
</pallas_src>

<mosaic_0001>
module attributes {stable_mosaic.version = 11 : i64} {
  func.func @sefe_block_kernel(%arg0: i32, %arg1: memref<1x16x64xf32, #tpu.memory_space<vmem>>, %arg2: memref<448x96xbf16, #tpu.memory_space<vmem>>, %arg3: memref<1x96xf32, #tpu.memory_space<vmem>>, %arg4: memref<64x32xbf16, #tpu.memory_space<vmem>>, %arg5: memref<96x32xbf16, #tpu.memory_space<vmem>>, %arg6: memref<1x32xf32, #tpu.memory_space<vmem>>, %arg7: memref<32x32xbf16, #tpu.memory_space<vmem>>, %arg8: memref<32x32xbf16, #tpu.memory_space<vmem>>, %arg9: memref<1x16x32xf32, #tpu.memory_space<vmem>>, %arg10: memref<32x64xbf16, #tpu.memory_space<vmem>>) attributes {dimension_semantics = [#tpu.dimension_semantics<parallel>], iteration_bounds = array<i64: 2>, scalar_prefetch = 0 : i64, scratch_operands = 1 : i64, tpu.core_type = #tpu.core_type<tc>, window_params = [{transform_indices = @transform_0, window_bounds = array<i64: 1, 16, 64>}, {pipeline_mode = #tpu.pipeline_mode<synchronous>, transform_indices = @transform_1, window_bounds = array<i64: 448, 96>}, {pipeline_mode = #tpu.pipeline_mode<synchronous>, transform_indices = @transform_2, window_bounds = array<i64: 1, 96>}, {pipeline_mode = #tpu.pipeline_mode<synchronous>, transform_indices = @transform_3, window_bounds = array<i64: 64, 32>}, {pipeline_mode = #tpu.pipeline_mode<synchronous>, transform_indices = @transform_4, window_bounds = array<i64: 96, 32>}, {pipeline_mode = #tpu.pipeline_mode<synchronous>, transform_indices = @transform_5, window_bounds = array<i64: 1, 32>}, {pipeline_mode = #tpu.pipeline_mode<synchronous>, transform_indices = @transform_6, window_bounds = array<i64: 32, 32>}, {pipeline_mode = #tpu.pipeline_mode<synchronous>, transform_indices = @transform_7, window_bounds = array<i64: 32, 32>}, {transform_indices = @transform_8, window_bounds = array<i64: 1, 16, 32>}]} {
    %c0 = arith.constant 0 : index
    %c0_0 = arith.constant 0 : index
    %c0_1 = arith.constant 0 : index
    %0 = vector.load %arg1[%c0, %c0_0, %c0_1] : memref<1x16x64xf32, #tpu.memory_space<vmem>>, vector<1x16x64xf32>
    %1 = vector.shape_cast %0 : vector<1x16x64xf32> to vector<16x64xf32>
    %2 = arith.truncf %1 : vector<16x64xf32> to vector<16x64xbf16>
    %cst = arith.constant 0.000000e+00 : bf16
    %3 = vector.broadcast %cst : bf16 to vector<3x64xbf16>
    %c5 = arith.constant 5 : index
    %c0_2 = arith.constant 0 : index
    %4 = vector.load %arg10[%c5, %c0_2] : memref<32x64xbf16, #tpu.memory_space<vmem>>, vector<3x64xbf16>
    tpu.vector_store %arg10[%c5, %c0_2], %3 {strides = array<i32>} : memref<32x64xbf16, #tpu.memory_space<vmem>>, vector<3x64xbf16>,
    %cst_3 = arith.constant 0.000000e+00 : bf16
    %5 = vector.broadcast %cst_3 : bf16 to vector<3x64xbf16>
    %c24 = arith.constant 24 : index
    %c0_4 = arith.constant 0 : index
    %6 = vector.load %arg10[%c24, %c0_4] : memref<32x64xbf16, #tpu.memory_space<vmem>>, vector<3x64xbf16>
    tpu.vector_store %arg10[%c24, %c0_4], %5 {strides = array<i32>} : memref<32x64xbf16, #tpu.memory_space<vmem>>, vector<3x64xbf16>,
    %c8 = arith.constant 8 : index
    %c0_5 = arith.constant 0 : index
    %7 = vector.load %arg10[%c8, %c0_5] : memref<32x64xbf16, #tpu.memory_space<vmem>>, vector<16x64xbf16>
    tpu.vector_store %arg10[%c8, %c0_5], %2 {strides = array<i32>} : memref<32x64xbf16, #tpu.memory_space<vmem>>, vector<16x64xbf16>,
    %c5_6 = arith.constant 5 : index
    %c0_7 = arith.constant 0 : index
    %8 = vector.load %arg10[%c5_6, %c0_7] : memref<32x64xbf16, #tpu.memory_space<vmem>>, vector<16x64xbf16>
    %c6 = arith.constant 6 : index
    %c0_8 = arith.constant 0 : index
    %9 = vector.load %arg10[%c6, %c0_8] : memref<32x64xbf16, #tpu.memory_space<vmem>>, vector<16x64xbf16>
    %c7 = arith.constant 7 : index
    %c0_9 = arith.constant 0 : index
    %10 = vector.load %arg10[%c7, %c0_9] : memref<32x64xbf16, #tpu.memory_space<vmem>>, vector<16x64xbf16>
    %c8_10 = arith.constant 8 : index
    %c0_11 = arith.constant 0 : index
    %11 = vector.load %arg10[%c8_10, %c0_11] : memref<32x64xbf16, #tpu.memory_space<vmem>>, vector<16x64xbf16>
    %c9 = arith.constant 9 : index
    %c0_12 = arith.constant 0 : index
    %12 = vector.load %arg10[%c9, %c0_12] : memref<32x64xbf16, #tpu.memory_space<vmem>>, vector<16x64xbf16>
    %c10 = arith.constant 10 : index
    %c0_13 = arith.constant 0 : index
    %13 = vector.load %arg10[%c10, %c0_13] : memref<32x64xbf16, #tpu.memory_space<vmem>>, vector<16x64xbf16>
    %c11 = arith.constant 11 : index
    %c0_14 = arith.constant 0 : index
    %14 = vector.load %arg10[%c11, %c0_14] : memref<32x64xbf16, #tpu.memory_space<vmem>>, vector<16x64xbf16>
    %15 = tpu.concatenate %8, %9, %10, %11, %12, %13, %14 in 1 : vector<16x64xbf16>, vector<16x64xbf16>, vector<16x64xbf16>, vector<16x64xbf16>, vector<16x64xbf16>, vector<16x64xbf16>, vector<16x64xbf16> -> vector<16x448xbf16>
    %c0_15 = arith.constant 0 : index
    %c0_16 = arith.constant 0 : index
    %16 = vector.load %arg2[%c0_15, %c0_16] : memref<448x96xbf16, #tpu.memory_space<vmem>>, vector<448x96xbf16>
    %cst_17 = arith.constant dense<0.000000e+00> : vector<16x96xf32>
    %17 = tpu.matmul %15, %16, %cst_17 {dimension_numbers = #tpu.dot_dimension_numbers<[1], [0], [0], [1], [0, 0, 1, 1], [], []>} : vector<16x448xbf16>, vector<448x96xbf16>, vector<16x96xf32> -> vector<16x96xf32>
    %c0_18 = arith.constant 0 : index
    %c0_19 = arith.constant 0 : index
    %18 = vector.load %arg3[%c0_18, %c0_19] : memref<1x96xf32, #tpu.memory_space<vmem>>, vector<1x96xf32>
    %19 = vector.broadcast %18 : vector<1x96xf32> to vector<16x96xf32>
    %20 = arith.addf %17, %19 : vector<16x96xf32>
    %cst_20 = arith.constant 0.000000e+00 : f32
    %21 = vector.broadcast %cst_20 : f32 to vector<16x96xf32>
    %22 = arith.maximumf %20, %21 : vector<16x96xf32>
    %c0_21 = arith.constant 0 : index
    %c0_22 = arith.constant 0 : index
    %23 = vector.load %arg4[%c0_21, %c0_22] : memref<64x32xbf16, #tpu.memory_space<vmem>>, vector<64x32xbf16>
    %cst_23 = arith.constant dense<0.000000e+00> : vector<16x32xf32>
    %24 = tpu.matmul %2, %23, %cst_23 {dimension_numbers = #tpu.dot_dimension_numbers<[1], [0], [0], [1], [0, 0, 1, 1], [], []>} : vector<16x64xbf16>, vector<64x32xbf16>, vector<16x32xf32> -> vector<16x32xf32>
    %25 = arith.truncf %22 : vector<16x96xf32> to vector<16x96xbf16>
    %c0_24 = arith.constant 0 : index
    %c0_25 = arith.constant 0 : index
    %26 = vector.load %arg5[%c0_24, %c0_25] : memref<96x32xbf16, #tpu.memory_space<vmem>>, vector<96x32xbf16>
    %cst_26 = arith.constant dense<0.000000e+00> : vector<16x32xf32>
    %27 = tpu.matmul %25, %26, %cst_26 {dimension_numbers = #tpu.dot_dimension_numbers<[1], [0], [0], [1], [0, 0, 1, 1], [], []>} : vector<16x96xbf16>, vector<96x32xbf16>, vector<16x32xf32> -> vector<16x32xf32>
    %28 = arith.addf %24, %27 : vector<16x32xf32>
    %c0_27 = arith.constant 0 : index
    %c0_28 = arith.constant 0 : index
    %29 = vector.load %arg6[%c0_27, %c0_28] : memref<1x32xf32, #tpu.memory_space<vmem>>, vector<1x32xf32>
    %30 = vector.broadcast %29 : vector<1x32xf32> to vector<16x32xf32>
    %31 = arith.addf %28, %30 : vector<16x32xf32>
    %cst_29 = arith.constant 0.000000e+00 : f32
    %32 = vector.broadcast %cst_29 : f32 to vector<16x32xf32>
    %33 = arith.maximumf %31, %32 : vector<16x32xf32>
    %cst_30 = arith.constant dense<0.000000e+00> : vector<32xf32>
    %34 = vector.multi_reduction <add>, %33, %cst_30 [0] : vector<16x32xf32> to vector<32xf32>
    %35 = vector.shape_cast %34 : vector<32xf32> to vector<1x32xf32>
    %cst_31 = arith.constant 1.600000e+01 : f32
    %36 = vector.broadcast %cst_31 : f32 to vector<1x32xf32>
    %37 = arith.divf %35, %36 : vector<1x32xf32>
    %38 = arith.truncf %37 : vector<1x32xf32> to vector<1x32xbf16>
    %c0_32 = arith.constant 0 : index
    %c0_33 = arith.constant 0 : index
    %39 = vector.load %arg7[%c0_32, %c0_33] : memref<32x32xbf16, #tpu.memory_space<vmem>>, vector<32x32xbf16>
    %cst_34 = arith.constant dense<0.000000e+00> : vector<1x32xf32>
    %40 = tpu.matmul %38, %39, %cst_34 {dimension_numbers = #tpu.dot_dimension_numbers<[1], [0], [0], [1], [0, 0, 1, 1], [], []>} : vector<1x32xbf16>, vector<32x32xbf16>, vector<1x32xf32> -> vector<1x32xf32>
    %cst_35 = arith.constant 0.000000e+00 : f32
    %41 = vector.broadcast %cst_35 : f32 to vector<1x32xf32>
    %42 = arith.maximumf %40, %41 : vector<1x32xf32>
    %43 = arith.truncf %42 : vector<1x32xf32> to vector<1x32xbf16>
    %c0_36 = arith.constant 0 : index
    %c0_37 = arith.constant 0 : index
    %44 = vector.load %arg8[%c0_36, %c0_37] : memref<32x32xbf16, #tpu.memory_space<vmem>>, vector<32x32xbf16>
    %cst_38 = arith.constant dense<0.000000e+00> : vector<1x32xf32>
    %45 = tpu.matmul %43, %44, %cst_38 {dimension_numbers = #tpu.dot_dimension_numbers<[1], [0], [0], [1], [0, 0, 1, 1], [], []>} : vector<1x32xbf16>, vector<32x32xbf16>, vector<1x32xf32> -> vector<1x32xf32>
    %46 = arith.negf %45 : vector<1x32xf32>
    %47 = math.exp %46 : vector<1x32xf32>
    %cst_39 = arith.constant 1.000000e+00 : f32
    %48 = vector.broadcast %cst_39 : f32 to vector<1x32xf32>
    %49 = arith.addf %48, %47 : vector<1x32xf32>
    %50 = arith.divf %48, %49 : vector<1x32xf32>
    %51 = vector.broadcast %50 : vector<1x32xf32> to vector<16x32xf32>
    %52 = arith.mulf %33, %51 : vector<16x32xf32>
    %c0_40 = arith.constant 0 : index
    %c0_41 = arith.constant 0 : index
    %c0_42 = arith.constant 0 : index
    %53 = vector.load %arg9[%c0_40, %c0_41, %c0_42] : memref<1x16x32xf32, #tpu.memory_space<vmem>>, vector<1x16x32xf32>
    %54 = vector.shape_cast %53 : vector<1x16x32xf32> to vector<16x32xf32>
    %55 = vector.shape_cast %52 : vector<16x32xf32> to vector<1x16x32xf32>
    tpu.vector_store %arg9[%c0_40, %c0_41, %c0_42], %55 {strides = array<i32>} : memref<1x16x32xf32, #tpu.memory_space<vmem>>, vector<1x16x32xf32>,
    return
  }
  func.func @transform_0(%arg0: i32) -> (i32, i32, i32) {
    %c0_i32 = arith.constant 0 : i32
    %c0_i32_0 = arith.constant 0 : i32
    %c0_i32_1 = arith.constant 0 : i32
    return %arg0, %c0_i32, %c0_i32_0 : i32, i32, i32
  }
  func.func @transform_1(%arg0: i32) -> (i32, i32) {
    %c0_i32 = arith.constant 0 : i32
    %c0_i32_0 = arith.constant 0 : i32
    %c0_i32_1 = arith.constant 0 : i32
    return %c0_i32, %c0_i32_0 : i32, i32
  }
  func.func @transform_2(%arg0: i32) -> (i32, i32) {
    %c0_i32 = arith.constant 0 : i32
    %c0_i32_0 = arith.constant 0 : i32
    %c0_i32_1 = arith.constant 0 : i32
    return %c0_i32, %c0_i32_0 : i32, i32
  }
  func.func @transform_3(%arg0: i32) -> (i32, i32) {
    %c0_i32 = arith.constant 0 : i32
    %c0_i32_0 = arith.constant 0 : i32
    %c0_i32_1 = arith.constant 0 : i32
    return %c0_i32, %c0_i32_0 : i32, i32
  }
  func.func @transform_4(%arg0: i32) -> (i32, i32) {
    %c0_i32 = arith.constant 0 : i32
    %c0_i32_0 = arith.constant 0 : i32
    %c0_i32_1 = arith.constant 0 : i32
    return %c0_i32, %c0_i32_0 : i32, i32
  }
  func.func @transform_5(%arg0: i32) -> (i32, i32) {
    %c0_i32 = arith.constant 0 : i32
    %c0_i32_0 = arith.constant 0 : i32
    %c0_i32_1 = arith.constant 0 : i32
    return %c0_i32, %c0_i32_0 : i32, i32
  }
  func.func @transform_6(%arg0: i32) -> (i32, i32) {
    %c0_i32 = arith.constant 0 : i32
    %c0_i32_0 = arith.constant 0 : i32
    %c0_i32_1 = arith.constant 0 : i32
    return %c0_i32, %c0_i32_0 : i32, i32
  }
  func.func @transform_7(%arg0: i32) -> (i32, i32) {
    %c0_i32 = arith.constant 0 : i32
    %c0_i32_0 = arith.constant 0 : i32
    %c0_i32_1 = arith.constant 0 : i32
    return %c0_i32, %c0_i32_0 : i32, i32
  }
  func.func @transform_8(%arg0: i32) -> (i32, i32, i32) {
    %c0_i32 = arith.constant 0 : i32
    %c0_i32_0 = arith.constant 0 : i32
    %c0_i32_1 = arith.constant 0 : i32
    return %arg0, %c0_i32, %c0_i32_0 : i32, i32, i32
  }
}

</mosaic_0001>

<bundles_post_ra>
// kernel: sefe_block_forward.1
= control target key start
LH: loop header
LB: loop body
LE: loop exit
PB: predicated region body
PF: predicated region fallthrough
CT: control target
= control target key end

     0   :  { %13 = vsyncpa [#allocation4], 0  ;;  %s1914_s0 = inlined_call_operand.vmem [shape: f32[2,16,64], index: 0, kind: input, shape index: {}]   ;;  %s1915_s1 = inlined_call_operand.vmem [shape: bf16[448,96], index: 1, kind: input, shape index: {}]   ;;  %s1916_s2 = inlined_call_operand.vmem [shape: f32[1,96], index: 2, kind: input, shape index: {}]   ;;  %s1917_s3 = inlined_call_operand.vmem [shape: bf16[64,32], index: 3, kind: input, shape index: {}]   ;;  %s1918_s4 = inlined_call_operand.vmem [shape: bf16[96,32], index: 4, kind: input, shape index: {}]   ;;  %s1919_s5 = inlined_call_operand.vmem [shape: f32[1,32], index: 5, kind: input, shape index: {}]   ;;  %s1920_s6 = inlined_call_operand.vmem [shape: bf16[32,32], index: 6, kind: input, shape index: {}]   ;;  %s1921_s7 = inlined_call_operand.vmem [shape: bf16[32,32], index: 7, kind: input, shape index: {}]   ;;  %s1922_s8 = inlined_call_operand.hbm [shape: f32[2,16,32], index: 8, kind: output, shape index: {}]  }
   0x1   :  { %15 = vsyncpa [#allocation4 + $0x1], 0  ;;  %s1576_s27 = smov 0   ;;  %s1578_s28 = smov 0  }
   0x2   :  { %s1580_s29 = smov 0   ;;  %s1582_s30 = smov 0  }
   0x3 LB: > { %s1597_s9 = sadd.s32 4294967295, %s1522_s30   ;;  %s1221_s10 = sadd.s32 4294967294, %s1522_s30   ;;  %s1522_s30 = sphi %s1582_s30, %s1928_s30   ;;  %s1518_s29 = sphi %s1580_s29, %s1927_s29   ;;  %s1514_s28 = sphi %s1578_s28, %s1926_s28   ;;  %s1510_s27 = sphi %s1576_s27, %s1925_s27  }
   0x4   : > { %s1601_s11 = sadd.s32 1, %s1522_s30   ;;  %s201_s12 = sadd.s32 1, %s1518_s29 }
   0x5   : > { %s198_s13 = ssub.s32 %s1522_s30, %s1601_s11  ;;  %p211_p0 = scmp.ne.s32.totalorder %s1518_s29, %s1514_s28 }
   0x6   : > { %p199_p1 = scmp.eq.s32.totalorder %s198_s13, 0  ;;  %p212_p2 = scmp.eq.s32.totalorder %s1597_s9, 1 }
   0x7   : > { %p217_p3 = scmp.ne.s32.totalorder %s1514_s28, %s1510_s27  ;;  %p218_p4 = scmp.eq.s32.totalorder %s1221_s10, 1 }
   0x8   : > { %s1612_s14 = scalar_select %p199_p1, %s1518_s29, %s201_s12  }
   0x9   : > { %p1614_p5 = por %p212_p2, %p211_p0  ;;  %p1618_p6 = por %p218_p4, %p217_p3 }
   0xa   : > { %p1224_p7 = scmp.ge.s32.totalorder %s1522_s30, 1  ;;  %p265_p8 = scmp.lt.s32.totalorder %s1522_s30, 3 }
   0xc   : > { %p266_p9 = pnand %p1224_p7, %p265_p8 }
   0xd   : > { %p299_p10 = scmp.lt.s32.totalorder (!%p266_p9), %s1597_s9, 1  ;;  %vm308_vm0 = vcmask (!%p266_p9), 519170   ;;  %vm309_vm1 = vsmask.f32 (!%p266_p9), 7946  ;;  %v311_v0 = vld [vmem:[#allocation2] sm:$0xc] (!%p266_p9) }
   0xe   : > { %269 = sbr.rel (%p266_p9) target bundleno = 1111 (0x457), region = 52  ;;  %vm314_vm2 = vcmask (!%p266_p9), 521220   ;;  %vm310_vm3 = vmand (!%p266_p9), %vm308_vm0, %vm309_vm1  ;;  %vm315_vm4 = vsmask.f32 (!%p266_p9), 5376  ;;  %v317_v2 = vld [vmem:[#allocation2 + $0x8] sm:$0x30] (!%p266_p9) }
   0xf   : > { %v312_v1 = vsel (!%p266_p9), %vm310_vm3, 0, %v311_v0  ;;  %vm316_vm5 = vmand (!%p266_p9), %vm314_vm2, %vm315_vm4  ;;  %v1524_v3 = vmov (!%p266_p9), 0   ;;  %v1414_v5 = vld [vmem:[%s1915_s1 + $0x80] sm:$0xff] (!%p266_p9)   ;;  %v1415_v6 = vld [vmem:[%s1915_s1 + $0x88] sm:$0xff] (!%p266_p9)   ;;  %vm323_vm6 = vcmask (!%p266_p9), 523268   ;;  %vm325_vm7 = vcmask (!%p266_p9), 519168  }
  0x10   : > { %774 = vmatprep.subr.bf16.mxu1 (!%p266_p9), %v1524_v3  ;;  %313 = vst [vmem:[#allocation2] sm:$0xc] (!%p266_p9), %v312_v1  ;;  %v318_v4 = vsel (!%p266_p9), %vm316_vm5, 0, %v317_v2  ;;  %v1417_v10 = vld [vmem:[%s1915_s1 + $0x40] sm:$0xff] (!%p266_p9)   ;;  %v1416_v12 = vld [vmem:[%s1915_s1 + $0x90] sm:$0xff] (!%p266_p9)   ;;  %v1420_v14 = vld [vmem:[%s1915_s1 + $0x48] sm:$0xff] (!%p266_p9)  }
  0x11   : > { %319 = vst [vmem:[#allocation2 + $0x8] sm:$0x30] (!%p266_p9), %v318_v4  ;;  %775 = vmatpush1.bf16.msra.mxu1 (!%p266_p9), %v1414_v5  ;;  %1285 = vmatprep.subr.bf16.mxu0 (!%p266_p9), %v1417_v10  ;;  %v1419_v13 = vld [vmem:[%s1915_s1] sm:$0xff] (!%p266_p9)   ;;  %v1418_v15 = vld [vmem:[%s1915_s1 + $0x98] sm:$0xff] (!%p266_p9)   ;;  %v1422_v16 = vld [vmem:[%s1915_s1 + $0x8] sm:$0xff] (!%p266_p9)   ;;  %vm357_vm10 = vcmask (!%p266_p9), 1046528  }
  0x12   : > { %776 = vmatprep.subr.bf16.mxu1 (!%p266_p9), %v1524_v3  ;;  %1286 = vmatpush3.bf16.msra.mxu0 (!%p266_p9), %v1419_v13  ;;  %vm361_vm8 = vsmask.f32 (!%p266_p9), 6400  ;;  %v1423_v17 = vld [vmem:[%s1915_s1 + $0x50] sm:$0xff] (!%p266_p9)   ;;  %vm335_vm9 = vsmask.f32 (!%p266_p9), 7424  ;;  %v1421_v18 = vld [vmem:[%s1915_s1 + $0xa0] sm:$0xff] (!%p266_p9)  }
  0x13   : > { %1287 = vmatprep.subr.bf16.mxu0 (!%p266_p9), %v1420_v14  ;;  %v1425_v19 = vld [vmem:[%s1915_s1 + $0x10] sm:$0xff] (!%p266_p9)   ;;  %v1426_v20 = vld [vmem:[%s1915_s1 + $0x58] sm:$0xff] (!%p266_p9)   ;;  %v1424_v43 = vld [vmem:[%s1915_s1 + $0xa8] sm:$0xff] (!%p266_p9)   ;;  %s1525_s12 = smov (!%p266_p9), 64   ;;  %vm385_vm11 = vcmask (!%p266_p9), 1045504   ;;  %vm412_vm12 = vcmask (!%p266_p9), 1044480  }
  0x14   : > { %v1428_v44 = vld [vmem:[%s1915_s1 + $0x18] sm:$0xff] (!%p266_p9)   ;;  %v1427_v55 = vld [vmem:[%s1915_s1 + $0xb0] sm:$0xff] (!%p266_p9)   ;;  %v1429_v56 = vld [vmem:[%s1915_s1 + $0x60] sm:$0xff] (!%p266_p9)   ;;  %vm416_vm13 = vcmask (!%p266_p9), 523264   ;;  %vm1527_vm14 = vmmov (!%p266_p9), 0   ;;  %vm874_vm15 = vcmask (!%p266_p9), 785408  }
  0x15   : > { %s300_s17 = scalar_select %p299_p10, %s1597_s9, 1  ;;  %777 = vmatpush1.bf16.msra.mxu1 %v1415_v6  ;;  %v1431_v61 = vld [vmem:[%s1915_s1 + $0x20] sm:$0xff]   ;;  %v1432_v0 = vld [vmem:[%s1915_s1 + $0x68] sm:$0xff]   ;;  %v1430_v1 = vld [vmem:[%s1915_s1 + $0xb8] sm:$0xff]   ;;  %vm998_vm0 = vcmask 261120  }
  0x16   : > { %778 = vmatprep.subr.bf16.mxu1 %v1524_v3  ;;  %1288 = vmatpush3.bf16.msra.mxu0 %v1422_v16  ;;  %v1434_v4 = vld [vmem:[%s1915_s1 + $0x28] sm:$0xff]   ;;  %v1435_v10 = vld [vmem:[%s1915_s1 + $0x70] sm:$0xff]   ;;  %v1438_v13 = vld [vmem:[%s1915_s1 + $0x78] sm:$0xff]   ;;  %s296_s21 = sand.u32 1, %s1514_s28   ;;  %s1284_s23 = sshll.u32 %s1597_s9, 8 }
  0x17   : > { %s1283_s18 = sshll.u32 %s300_s17, 4  ;;  %1289 = vmatprep.subr.bf16.mxu0 %v1423_v17  ;;  %v1436_v17 = vld [vmem:[%s1915_s1 + $0xc8] sm:$0xff]   ;;  %s1225_s22 = sshll.u32 %s296_s21, 4 }
  0x18   : > { %s303_s25 = scalar_lea.vmem %s1914_s0, %s1283_s18  ;;  %s1867_s10 = scalar_lea.hbm %s1922_s8, %s1284_s23 }
  0x19   : > { %v305_v7 = vld [vmem:[%s303_s25] sm:$0xff]  ;;  %v306_v8 = vld [vmem:[%s303_s25 + $0x8] sm:$0xff]  ;;  %779 = vmatpush1.bf16.msra.mxu1 %v1416_v12  ;;  %s1873_s9 = scalar_lea.sflag [#allocation4], %s296_s21  ;;  %s1528_s17 = smov [#allocation3]  }
  0x1a   : > { %v1637_v9 = vpack.c.bf16 %v306_v8, %v305_v7  ;;  %780 = vmatprep.subr.bf16.mxu1 %v1524_v3  ;;  %1290 = vmatpush3.bf16.msra.mxu0 %v1425_v19  ;;  %v1433_v8 = vld [vmem:[%s1915_s1 + $0xc0] sm:$0xff]   ;;  %s1464_s18 = sshll.u32 %s1528_s17, 4  ;;  %s1465_s18 = int_to_ptr.vmem [resolvable:$false] %s1464_s18 }
  0x1b   : > { %1291 = vmatprep.subr.bf16.mxu0 %v1426_v20  ;;  %s1466_s19 = scalar_lea.vmem %s1465_s18, 512 }
  0x1c   : > { %v321_v11 = vrot.slane %v1637_v9, 4 }
  0x1d   : > { %781 = vmatpush1.bf16.msra.mxu1 %v1418_v15  ;;  %v1440_v15 = vld [vmem:[%s1915_s1 + $0x38] sm:$0xff]  }
  0x1e   : > { %324 = vst.msk [vmem:[#allocation2] sm:$0xf0] %vm323_vm6, %v321_v11  ;;  %782 = vmatprep.subr.bf16.mxu1 %v1524_v3  ;;  %1292 = vmatpush3.bf16.msra.mxu0 %v1428_v44 }
  0x1f   : > { %326 = vst.msk [vmem:[#allocation2 + $0x8] sm:$0xf] %vm325_vm7, %v321_v11  ;;  %1293 = vmatprep.subr.bf16.mxu0 %v1429_v56  ;;  %v1437_v11 = vld [vmem:[%s1915_s1 + $0x30] sm:$0xff]  }
  0x21   : > { %783 = vmatpush1.bf16.msra.mxu1 %v1421_v18 }
  0x22   : > { %784 = vmatprep.subr.bf16.mxu1 %v1524_v3  ;;  %1294 = vmatpush3.bf16.msra.mxu0 %v1431_v61 }
  0x23   : > { %1295 = vmatprep.subr.bf16.mxu0 %v1432_v0 }
  0x25   : > { %v1675_v22 = vld [vmem:[#allocation2] sm:$0xf0]  ;;  %785 = vmatpush1.bf16.msra.mxu1 %v1424_v43 }
  0x26   : > { %v1673_v21 = vld [vmem:[#allocation2 + $0x8] sm:$0xf]  ;;  %v363_v24 = vshrl.u32 %v1675_v22, 16  ;;  %v366_v25 = vshll.u32 %v1675_v22, 16  ;;  %v329_v28 = vld [vmem:[#allocation2] sm:$0xf8]  ;;  %786 = vmatprep.subr.bf16.mxu1 %v1524_v3  ;;  %1296 = vmatpush3.bf16.msra.mxu0 %v1434_v4 }
  0x27   : > { %v1677_v23 = vld [vmem:[#allocation2 + $0x8] sm:$0x7]  ;;  %v371_v26 = vshrl.u32 %v1673_v21, 16  ;;  %v374_v27 = vshll.u32 %v1673_v21, 16  ;;  %v337_v29 = vshrl.u32 %v329_v28, 16  ;;  %v339_v30 = vshll.u32 %v329_v28, 16  ;;  %1297 = vmatprep.subr.bf16.mxu0 %v1435_v10 }
  0x28   : > { %v344_v31 = vshll.u32 %v1677_v23, 16  ;;  %v348_v32 = vshrl.u32 %v1677_v23, 16  ;;  %v1686_v33 = vld [vmem:[#allocation2 + $0x8] sm:$0x1f]  ;;  %v365_v34 = vrot.slane %v363_v24, 1  ;;  %v368_v35 = vrot.slane %v366_v25, 2 }
  0x29   : > { %v373_v36 = vrot.slane %v371_v26, 1  ;;  %v376_v37 = vrot.slane %v374_v27, 2  ;;  %v1688_v38 = vld [vmem:[#allocation2] sm:$0xe0]  ;;  %v341_v39 = vrot.slane %v339_v30, 1  ;;  %v398_v47 = vshrl.u32 %v1686_v33, 16  ;;  %787 = vmatpush1.bf16.msra.mxu1 %v1427_v55 }
  0x2a   : > { %v346_v40 = vrot.slane %v344_v31, 1  ;;  %v390_v41 = vshrl.u32 %v1688_v38, 16  ;;  %v393_v42 = vshll.u32 %v1688_v38, 16  ;;  %v369_v45 = vor.u32 %v368_v35, %v365_v34  ;;  %788 = vmatprep.subr.bf16.mxu1 %v1524_v3  ;;  %1298 = vmatpush3.bf16.msra.mxu0 %v1437_v11  ;;  %v334_v16 = vld [vmem:[#allocation2 + $0x8] sm:$0x3f]  ;;  %v1439_v24 = vld [vmem:[%s1915_s1 + $0xd0] sm:$0xff]  }
  0x2b   : > { %v377_v46 = vor.u32 %v376_v37, %v373_v36  ;;  %v401_v48 = vshll.u32 %v1686_v33, 16  ;;  %v342_v49 = vor.u32 %v341_v39, %v337_v29  ;;  %v400_v53 = vrot.slane %v398_v47, 2  ;;  %1299 = vmatprep.subr.bf16.mxu0 %v1438_v13  ;;  %v327_v37 = vld [vmem:[#allocation2] sm:$0xfc] }
  0x2c   : > { %v392_v50 = vrot.slane %v390_v41, 2  ;;  %v395_v51 = vrot.slane %v393_v42, 3  ;;  %v350_v58 = vor.u32 %v348_v32, %v346_v40  ;;  %v359_v62 = vrot.slane %v1673_v21, 1  ;;  %v1441_v32 = vld [vmem:[%s1915_s1 + $0xd8] sm:$0xff]   ;;  %v1442_v10 = vld [vmem:[%s1918_s4] sm:$0xff]  }
  0x2d   : > { %v378_v52 = vsel %vm361_vm8, %v369_v45, %v377_v46  ;;  %v403_v54 = vrot.slane %v401_v48, 3  ;;  %v347_v57 = vsel %vm335_vm9, %v342_v49, %v346_v40  ;;  %v358_v63 = vrot.slane %v329_v28, 1  ;;  %789 = vmatpush1.bf16.msra.mxu1 %v1430_v1 }
  0x2e   : > { %379 = vrot.lane.b32.xlu0 %v378_v52, %s1525_s12  ;;  %351 = vrot.lane.b32.xlu1 %v347_v57, %s1525_s12  ;;  %v396_v59 = vor.u32 %v395_v51, %v392_v50  ;;  %v386_v5 = vrot.slane %v1675_v22, 2  ;;  %v387_v7 = vrot.slane %v1686_v33, 2  ;;  %v413_v14 = vrot.slane %v1688_v38, 3 }
  0x2f   : > { %v404_v60 = vor.u32 %v403_v54, %v400_v53  ;;  %v360_v2 = vsel %vm357_vm10, %v358_v63, %v359_v62  ;;  %790 = vmatprep.subr.bf16.mxu1 %v1524_v3  ;;  %v414_v18 = vrot.slane %v334_v16, 3  ;;  %1300 = vmatpush3.bf16.msra.mxu0 %v1440_v15  ;;  %v1526_v29 = vmov 0.0  }
  0x30   : > { %v1745_v12 = vsel %vm385_vm11, %v386_v5, %v387_v7  ;;  %1325 = vmatprep.subr.bf16.mxu0 %v1526_v29 }
  0x31   : > { %v405_v6 = vsel %vm315_vm4, %v396_v59, %v404_v60  ;;  %791 = vmatpush1.bf16.msra.mxu1 %v1433_v8  ;;  %v415_v19 = vsel %vm412_vm12, %v413_v14, %v414_v18  ;;  %v551_v20 = vshrl.u32 %v414_v18, 16  ;;  %v554_v22 = vshll.u32 %v414_v18, 16  ;;  %v1444_v18 = vld [vmem:[%s1917_s3] sm:$0xff]  }
  0x32   : > { %381 = vrot.lane.b32.xlu0 %v377_v46, %s1525_s12  ;;  %353 = vrot.lane.b32.xlu1 %v350_v58, %s1525_s12  ;;  %v543_v25 = vshrl.u32 %v415_v19, 16  ;;  %v546_v26 = vshll.u32 %v415_v19, 16 }
  0x33   : > { %792 = vmatprep.subr.bf16.mxu1 %v1524_v3  ;;  %v553_v27 = vrot.slane %v551_v20, 2  ;;  %v556_v28 = vrot.slane %v554_v22, 3  ;;  %v1445_v20 = vld [vmem:[%s1918_s4 + $0x10] sm:$0xff]   ;;  %v1446_v22 = vld [vmem:[%s1917_s3 + $0x8] sm:$0xff]  }
  0x34   : > { %v545_v30 = vrot.slane %v543_v25, 2  ;;  %v548_v31 = vrot.slane %v546_v26, 3  ;;  %v1448_v25 = vld [vmem:[%s1917_s3 + $0x10] sm:$0xff]   ;;  %v1449_v26 = vld [vmem:[%s1918_s4 + $0x20] sm:$0xff]  }
  0x35   : > { %793 = vmatpush1.bf16.msra.mxu1 %v1436_v17  ;;  %v557_v34 = vor.u32 %v556_v28, %v553_v27  ;;  %v1443_v17 = vld [vmem:[%s1918_s4 + $0x8] sm:$0xff]   ;;  %v1450_v27 = vld [vmem:[%s1917_s3 + $0x18] sm:$0xff]  }
  0x36   : > { %406 = vrot.lane.b32.xlu0 %v405_v6, %s1525_s12  ;;  %408 = vrot.lane.b32.xlu1 %v404_v60, %s1525_s12  ;;  %v549_v35 = vor.u32 %v548_v31, %v545_v30  ;;  %v1451_v28 = vld [vmem:[%s1918_s4 + $0x28] sm:$0xff]   ;;  %s298_s12 = scalar_lea.vmem [#allocation3], %s1225_s22 }
  0x37   : > { %794 = vmatprep.subr.bf16.mxu1 %v1524_v3  ;;  %s1159_s24 = sshll.u32 %s298_s12, 4  ;;  %s1869_s24 = int_to_ptr.vmem [resolvable:$true] %s1159_s24 }
  0x38   : > { %v558_v36 = vsel %vm315_vm4, %v549_v35, %v557_v34  ;;  %s1460_s13 = scalar_lea.vmem %s1869_s24, 256  ;;  %p1467_p0 = scmp.lt.s32.totalorder %s1869_s24, %s1465_s18 }
  0x39   : > { %795 = vmatpush1.bf16.msra.mxu1 %v1439_v24  ;;  %1257 = vmatprep.mubr.msk.bf16.mxu1 %vm416_vm13, %v558_v36  ;;  %v1447_v24 = vld [vmem:[%s1918_s4 + $0x18] sm:$0xff]   ;;  %p1461_p11 = scmp.ne.s32.totalorder %s1869_s24, %s1460_s13  ;;  %p1468_p1 = scmp.lt.s32.totalorder %s1466_s19, %s1460_s13 }
  0x3a   : > { %796 = vmatprep.subr.bf16.mxu1 %v1524_v3 }
  0x3b   : > { %p1462_p12 = pnand %p1461_p11, %p1614_p5  ;;  %p1469_p2 = por %p1468_p1, %p1467_p0 }
  0x3d   : > { %797 = vmatpush1.bf16.msra.mxu1 %v1441_v32  ;;  %v1228_v32 = vld [vmem:[%s1916_s2] ss:$0 sm:$0xff]  ;;  %p1463_p13 = pneg %p1462_p12 }
  0x3e   : > { %1341 = vmatprep.subr.bf16.mxu1 %v1526_v29 }
  0x3f   : > { %p1470_p3 = pnand %p1469_p2, %p1463_p13 }
  0xa0   : > { %v380_v38 = vpop.permute.xlu0 %379  ;;  %v352_v40 = vpop.permute.xlu1 %351 }
  0xa1   : > { %v424_v39 = vsel %vm416_vm13, %v360_v2, %v380_v38  ;;  %v419_v43 = vsel %vm416_vm13, %v327_v37, %v352_v40 }
  0xa2   : > { %v512_v41 = vshrl.u32 %v424_v39, 16  ;;  %v515_v42 = vshll.u32 %v424_v39, 16  ;;  %v497_v44 = vshrl.u32 %v419_v43, 16  ;;  %v500_v45 = vshll.u32 %v419_v43, 16 }
  0xa4   : > { %v382_v46 = vpop.permute.xlu0 %381  ;;  %v514_v3 = vrot.slane %v512_v41, 2  ;;  %v517_v47 = vrot.slane %v515_v42, 3  ;;  %v354_v49 = vpop.permute.xlu1 %353  ;;  %v499_v53 = vrot.slane %v497_v44, 2  ;;  %v502_v54 = vrot.slane %v500_v45, 3 }
  0xa5   : > { %v427_v48 = vsel %vm416_vm13, %v359_v62, %v382_v46  ;;  %v421_v52 = vsel %vm416_vm13, %v1677_v23, %v354_v49 }
  0xa6   : > { %v519_v50 = vshrl.u32 %v427_v48, 16  ;;  %v522_v51 = vshll.u32 %v427_v48, 16  ;;  %v504_v55 = vshrl.u32 %v421_v52, 16  ;;  %v507_v56 = vshll.u32 %v421_v52, 16  ;;  %v1453_v52 = vld [vmem:[%s1920_s6 + $0x8] sm:$0xff]  }
  0xa7   : > { %v518_v62 = vor.u32 %v517_v47, %v514_v3  ;;  %v503_v4 = vor.u32 %v502_v54, %v499_v53  ;;  %v1270_v54 = vld [vmem:[%s1919_s5] ss:$0 sm:$0xff] }
  0xa8   : > { %v521_v57 = vrot.slane %v519_v50, 2  ;;  %v524_v58 = vrot.slane %v522_v51, 3  ;;  %v407_v59 = vpop.permute.xlu0 %406  ;;  %v506_v60 = vrot.slane %v504_v55, 2  ;;  %v509_v61 = vrot.slane %v507_v56, 3  ;;  %v409_v63 = vpop.permute.xlu1 %408  ;;  %v1452_v51 = vld [vmem:[%s1920_s6] sm:$0xff]  }
  0xa9   : > { %v430_v21 = vsel %vm416_vm13, %v1745_v12, %v407_v59  ;;  %v433_v23 = vsel %vm416_vm13, %v387_v7, %v409_v63 }
  0xaa   : > { %v527_v0 = vshrl.u32 %v430_v21, 16  ;;  %v530_v1 = vshll.u32 %v430_v21, 16  ;;  %v525_v2 = vor.u32 %v524_v58, %v521_v57  ;;  %v510_v5 = vor.u32 %v509_v61, %v506_v60 }
  0xab   : > { %v534_v6 = vshrl.u32 %v433_v23, 16  ;;  %v537_v8 = vshll.u32 %v433_v23, 16 }
  0xac   : > { %v529_v11 = vrot.slane %v527_v0, 2  ;;  %v532_v13 = vrot.slane %v530_v1, 3  ;;  %v526_v12 = vsel %vm315_vm4, %v518_v62, %v525_v2  ;;  %v511_v33 = vsel %vm315_vm4, %v503_v4, %v510_v5 }
  0xad   : > { %v536_v14 = vrot.slane %v534_v6, 2  ;;  %v539_v15 = vrot.slane %v537_v8, 3  ;;  %765 = vmatprep.mubr.bf16.mxu0 %v526_v12  ;;  %v1455_v12 = vld [vmem:[%s1921_s7 + $0x8] sm:$0xff]  }
  0xae   : > { %v533_v16 = vor.u32 %v532_v13, %v529_v11  ;;  %766 = vmatmul.mubr.bf16.vlgmr.msra.gmra.mrb[0].mxu0 %v511_v33  ;;  %v1454_v11 = vld [vmem:[%s1921_s7] sm:$0xff]  }
  0xaf   : > { %v540_v7 = vor.u32 %v539_v15, %v536_v14  ;;  %1326 = vmatpush3.bf16.msra.mxu0 %v1442_v10  ;;  %1337 = vmatprep.mubr.msk.bf16.mxu0 %vm1527_vm14, %v1526_v29 }
  0xb0   : > { %1327 = vmatprep.subr.bf16.mxu0 %v1526_v29 }
  0xb1   : > { %v541_v19 = vsel %vm315_vm4, %v533_v16, %v540_v7 }
  0xb2   : > { %807 = vmatmul.mubr.bf16.vlgmr.msra.gmra.mrb[0].mxu1 %v541_v19 }
  0xb3   : > { %1328 = vmatpush3.bf16.msra.mxu0 %v1443_v17  ;;  %1342 = vmatpush3.bf16.msra.mxu1 %v1444_v18 }
  0xb4   : > { %1329 = vmatprep.subr.bf16.mxu0 %v1526_v29  ;;  %1343 = vmatprep.subr.bf16.mxu1 %v1526_v29 }
  0xb5   : > { %1349 = vmatprep.mubr.msk.bf16.mxu1 %vm1527_vm14, %v1526_v29 }
  0xb7   : > { %1330 = vmatpush3.bf16.msra.mxu0 %v1445_v20  ;;  %1344 = vmatpush3.bf16.msra.mxu1 %v1446_v22 }
  0xb8   : > { %1331 = vmatprep.subr.bf16.mxu0 %v1526_v29  ;;  %1345 = vmatprep.subr.bf16.mxu1 %v1526_v29 }
  0xbb   : > { %1332 = vmatpush3.bf16.msra.mxu0 %v1447_v24  ;;  %1346 = vmatpush3.bf16.msra.mxu1 %v1448_v25 }
  0xbc   : > { %1333 = vmatprep.subr.bf16.mxu0 %v1526_v29  ;;  %1347 = vmatprep.subr.bf16.mxu1 %v1526_v29 }
  0xbf   : > { %1334 = vmatpush3.bf16.msra.mxu0 %v1449_v26  ;;  %1348 = vmatpush3.bf16.msra.mxu1 %v1450_v27  ;;  %v1137_v26 = vlaneseq }
  0xc0   : > { %1335 = vmatprep.subr.bf16.mxu0 %v1526_v29 }
  0xc1   : > { %v1138_v27 = vshrl.u32 %v1137_v26, 7 }
  0xc2   : > { %1350 = vmatmul.mubr.msk.bf16.vlgmr.msra.gmra.mrb[4].mxu1 %vm416_vm13, %v1637_v9 }
  0xc3   : > { %1336 = vmatpush3.bf16.msra.mxu0 %v1451_v28  ;;  %v1139_v28 = vsub.s32 0, %v1138_v27 }
  0xc4   : > { %1353 = vmatprep.subr.bf16.mxu0 %v1526_v29 }
 0x181   : > { %v1301_v30 = vpop.f32.mrb[0].mxu0 }
 0x182   : > { %v1302_v31 = vpop.f32.mrb[1].mxu0 }
 0x183   : > { %v1303_v34 = vadd.f32 %v1302_v31, %v1301_v30  ;;  %v1304_v35 = vpop.f32.mrb[2].mxu0 }
 0x184   : > { %v1305_v36 = vpop.f32.mrb[3].mxu0 }
 0x185   : > { %v1306_v37 = vadd.f32 %v1305_v36, %v1304_v35  ;;  %v768_v38 = vadd.f32 %v1303_v34, %v1228_v32  ;;  %v808_v39 = vpop.f32.mrb[0].mxu1 }
 0x186   : > { %v810_v40 = vpop.f32.mrb[1].mxu1 }
 0x187   : > { %v809_v41 = vadd.f32 %v808_v39, %v768_v38  ;;  %v771_v42 = vadd.f32 %v1306_v37, %v1228_v32  ;;  %v811_v43 = vpop.f32.mrb[2].mxu1 }
 0x188   : > { %v813_v44 = vpop.f32.mrb[3].mxu1 }
 0x189   : > { %v812_v9 = vadd.f32 %v811_v43, %v771_v42  ;;  %v815_v45 = vmax.f32 %v809_v41, 0.0 }
 0x18b   : > { %v816_v46 = vmax.f32 %v812_v9, 0.0 }
 0x18d   : > { %v825_v3 = vpack.c.bf16 %v816_v46, %v815_v45 }
 0x18f   : > { %1338 = vmatmul.mubr.msk.bf16.vlgmr.msra.gmra.mrb[4].mxu0 %vm874_vm15, %v825_v3 }
 0x190   : > { %1357 = vmatprep.mubr.msk.bf16.mxu0 %vm1527_vm14, %v1526_v29  ;;  %1354 = vmatpush3.bf16.msra.mxu0 %v1452_v51 }
 0x191   : > { %1355 = vmatprep.subr.bf16.mxu0 %v1526_v29 }
 0x194   : > { %1356 = vmatpush3.bf16.msra.mxu0 %v1453_v52 }
 0x195   : > { %v980_v47 = vpop.f32.mrb[4].mxu1  ;;  %1361 = vmatprep.subr.bf16.mxu0 %v1526_v29 }
 0x196   : > { %v1351_v48 = vpop.f32.mrb[5].mxu1 }
 0x197   : > { %v983_v49 = vpop.f32.mrb[6].mxu1 }
 0x198   : > { %v1352_v50 = vpop.f32.mrb[7].mxu1 }
 0x262   : > { %v912_v53 = vpop.f32.mrb[4].mxu0 }
 0x263   : > { %v981_v55 = vadd.f32 %v980_v47, %v912_v53  ;;  %v1339_v56 = vpop.f32.mrb[5].mxu0 }
 0x264   : > { %v915_v57 = vpop.f32.mrb[6].mxu0 }
 0x265   : > { %v994_v58 = vadd.f32 %v1270_v54, %v981_v55  ;;  %v984_v59 = vadd.f32 %v983_v49, %v915_v57  ;;  %v1340_v60 = vpop.f32.mrb[7].mxu0 }
 0x267   : > { %v996_v61 = vmax.f32 %v994_v58, 0.0  ;;  %v995_v21 = vadd.f32 %v1270_v54, %v984_v59 }
 0x269   : > { %v997_v63 = vmax.f32 %v995_v21, 0.0  ;;  %v999_v62 = vsel %vm998_vm0, %v996_v61, 0.0 }
 0x26b   : > { %v1000_v0 = vsel %vm998_vm0, %v997_v63, 0.0 }
 0x26c   : > { %v1001_v1 = vadd.f32 %v1000_v0, %v999_v62 }
 0x26e   : > { %v1002_v23 = vrot.slane %v1001_v1, 4 }
 0x270   : > { %v1003_v2 = vadd.f32 %v1002_v23, %v1001_v1 }
 0x272   : > { %v1004_v4 = vrot.slane %v1003_v2, 2 }
 0x274   : > { %v1005_v5 = vadd.f32 %v1004_v4, %v1003_v2 }
 0x276   : > { %v1006_v6 = vrot.slane %v1005_v5, 1 }
 0x278   : > { %v1007_v8 = vadd.f32 %v1006_v6, %v1005_v5 }
 0x27a   : > { %v1009_v10 = vmul.f32 0.0625, %v1007_v8 }
 0x27c   : > { %v1010_v13 = vpack.c.bf16 %v1009_v10, %v1009_v10 }
 0x27e   : > { %1358 = vmatmul.mubr.msk.bf16.vlgmr.msra.gmra.mrb[8].mxu0 %vm998_vm0, %v1010_v13 }
 0x27f   : > { %1362 = vmatpush3.bf16.msra.mxu0 %v1454_v11  ;;  %1365 = vmatprep.mubr.msk.bf16.mxu0 %vm1527_vm14, %v1526_v29 }
 0x280   : > { %1363 = vmatprep.subr.bf16.mxu0 %v1526_v29 }
 0x283   : > { %1364 = vmatpush3.bf16.msra.mxu0 %v1455_v12 }
 0x351   : > { %v1064_v14 = vpop.f32.mrb[8].mxu0 }
 0x352   : > { %v1070_v15 = vmax.f32 %v1064_v14, 0.0  ;;  %v1359_v33 = vpop.f32.mrb[9].mxu0 }
 0x353   : > { %v1067_v16 = vpop.f32.mrb[10].mxu0 }
 0x354   : > { %v1071_v7 = vpack.c.bf16 %v1070_v15, %v1070_v15  ;;  %v1360_v17 = vpop.f32.mrb[11].mxu0 }
 0x356   : > { %1366 = vmatmul.mubr.msk.bf16.vlgmr.msra.gmra.mrb[12].mxu0 %vm998_vm0, %v1071_v7 }
 0x429   : > { %v1125_v18 = vpop.f32.mrb[12].mxu0 }
 0x42a   : > { %v1277_v19 = vmul.f32 -1.442695, %v1125_v18  ;;  %v1367_v20 = vpop.f32.mrb[13].mxu0 }
 0x42b   : > { %v1128_v22 = vpop.f32.mrb[14].mxu0 }
 0x42c   : > { %1456 = vpow2.f32 %v1277_v19  ;;  %v1368_v29 = vpop.f32.mrb[15].mxu0 }
 0x436   : > { %v1457_v24 = vpop.eup %1456 }
 0x437   : > { %v1134_v25 = vadd.f32 1.0, %v1457_v24 }
 0x439   : > { %1458 = vrcp.f32 %v1134_v25 }
 0x443   : > { %v1459_v30 = vpop.eup %1458 }
 0x444   : > { %v1140_v31 = vrot.slane %v1459_v30, %v1139_v28 }
 0x446   : > { %v1141_v32 = vmul.f32 %v1140_v31, %v996_v61  ;;  %v1142_v34 = vmul.f32 %v1140_v31, %v997_v63 }
 0x448   : > { %1143 = vst.msk [vmem:[%s298_s12] sm:$0xff] %vm998_vm0, %v1141_v32  ;;  %1144 = vst.msk [vmem:[%s298_s12 + $0x8] sm:$0xff] %vm998_vm0, %v1142_v34 }
 0x449   : > { %1473 = shalt.err (!%p1470_p3)
}
 0x44a   : > { %s1474_s20 = scalar_lea.hbm %s1867_s10, 256  ;;  %s1478_s23 = scalar_lea.hbm %s1922_s8, 512 }
 0x44b   : > { %p1475_p4 = scmp.ne.s32.totalorder %s1867_s10, %s1474_s20  ;;  %p1479_p9 = scmp.lt.u32.totalorder %s1867_s10, %s1922_s8 }
 0x44c   : > { %p1480_p10 = scmp.lt.u32.totalorder %s1478_s23, %s1474_s20  ;;  %p1482_p12 = scmp.lt.u32.totalorder %s1474_s20, %s1867_s10 }
 0x44d   : > { %p1476_p7 = pnand %p1475_p4, %p1614_p5 }
 0x44e   : > { %p1481_p11 = por %p1480_p10, %p1479_p9 }
 0x44f   : > { %p1477_p8 = pneg %p1476_p7 }
 0x450   : > { %p1483_p13 = por %p1482_p12, %p1481_p11 }
 0x452   : > { %p1484_p0 = pnand %p1483_p13, %p1477_p8 }
 0x454   : > { %1487 = shalt.err (!%p1484_p0)
}
 0x455   : > { %s1529_s26 = smov 128   ;;  %s1530_s13 = smov 8  }
 0x456   : > { %1369 = dma.vmem_to_hbm [thread:$0]  (%p1614_p5), %s1869_s24, 256, %s1867_s10, %s1873_s9, %s1529_s26, %s1529_s26, %s1530_s13  }
 0x457 PF: > { %p1375_p1 = scmp.ge.s32.totalorder %s1522_s30, 2  ;;  %s1174_s17 = sand.u32 1, %s1510_s27  }
 0x458   : > { %s1175_s18 = scalar_lea.sflag [#allocation4], %s1174_s17 }
 0x459   : > { %p1372_p2 = pnand %p1375_p1, %p1618_p6 }
 0x45b   : > { %1505 = dma.done.wait (!%p1372_p2), %s1175_s18, 256  }
 0x45c   : > { %1507 = vsyncadd (!%p1372_p2), %s1175_s18, 4294967040  ;;  %p18_p3 = scmp.ge.s32.totalorder %s1601_s11, 4   ;;  %s1925_s27 = smov %s1514_s28 }
 0x45d   : > { %s1926_s28 = smov %s1518_s29  ;;  %s1927_s29 = smov %s1612_s14 }
 0x45e   : > { %s1928_s30 = smov %s1601_s11  ;;  %20 = sbr.rel (!%p18_p3) target bundleno = 3 (0x3), region = 87 }
 0x465   :  { %1180 = vsyncpa [#allocation4], 1 }
 0x466   :  { %1182 = vsyncpa [#allocation4 + $0x1], 1 }

</bundles_post_ra>
